<compile_context>
chip_gen: v6e
topology: v6e:2x2x1
jax: 0.10.0
libtpu: 0.0.40
codegen_flags: <defaults>
</compile_context>

<pallas_src>
import functools

import jax
import jax.numpy as jnp
from jax.experimental import pallas as pl
from jax.experimental.pallas import tpu as pltpu

K = 11            # conv kernel size
PAD = 5           # conv padding
DXP = 16          # dx banks padded 11 -> 16 (sublane aligned)
KD = K * DXP      # folded contraction depth: 176
C_GSX, C_GSX2, C_LOG, C_GS = 18, 18, 8, 4
C_OUT = C_GSX + C_GSX2 + C_LOG + C_GS   # 48


def _filter_bank():
    # Deterministic Gaussian-family 11x11 filters matching the four sub-modules:
    #   GS_X (18): 1st x-derivative of Gaussian, GS_X2 (18): 2nd x-derivative,
    #   LOG (8): Laplacian of Gaussian, GS (4): Gaussian.
    # TODO(synk): GS_X / GS_X2 / LOG / GS class definitions are not in the provided snippet;
    # they are modeled here as fixed 1->C conv2d filter banks (no bias).
    ax = jnp.arange(K, dtype=jnp.float32) - (K - 1) / 2.0
    yy, xx = jnp.meshgrid(ax, ax, indexing="ij")

    def gauss(sigma):
        g = jnp.exp(-(xx ** 2 + yy ** 2) / (2.0 * sigma ** 2))
        return g / jnp.sum(g)

    def sigmas(n):
        return [0.8 + 0.35 * i for i in range(n)]

    gs_x = [(-xx / s ** 2) * gauss(s) for s in sigmas(C_GSX)]
    gs_x2 = [((xx ** 2 / s ** 4) - 1.0 / s ** 2) * gauss(s) for s in sigmas(C_GSX2)]
    log = [(((xx ** 2 + yy ** 2) / s ** 4) - 2.0 / s ** 2) * gauss(s) for s in sigmas(C_LOG)]
    gs = [gauss(s) for s in sigmas(C_GS)]

    # concatenation order matches forward(): cat((x1, x2, x3, x4), dim=1)
    w = jnp.stack(gs_x + gs_x2 + log + gs, axis=0)  # (48, 11, 11)
    return w.astype(jnp.float32)


def _lm_kernel(x_hbm, w_ref, o_ref, xbuf, sem, *, wp, th):
    # x_hbm: (N, DXP, (H+10)*wp) banked, lane-padded, flattened input (stays in HBM)
    # w_ref: (C_OUT, KD)   folded lane-dense weights, resident in VMEM
    # o_ref: (1, C_OUT, th*wp)  lane-dense output tile (BlockSpec pipelined)
    # xbuf : (2, DXP, (th+10)*wp) VMEM double buffer for the haloed input window
    # sem  : (2,) DMA semaphores
    tl = th * wp                  # output elements per tile
    win = (th + 2 * PAD) * wp     # input window incl. 10 halo rows
    n = pl.program_id(0)
    t = pl.program_id(1)
    num_rt = pl.num_programs(1)

    def fetch(tt, slot):
        pltpu.make_async_copy(x_hbm.at[n, :, pl.ds(tt * tl, win)],
                              xbuf.at[slot], sem.at[slot]).start()

    # prime the pipeline at the first row-tile of every image (works per-core under megacore)
    @pl.when(t == 0)
    def _prime():
        fetch(0, 0)

    slot = t % 2

    # wait for this tile's window (descriptor rebuilt; shapes define the wait)
    pltpu.make_async_copy(x_hbm.at[n, :, pl.ds(t * tl, win)],
                          xbuf.at[slot], sem.at[slot]).wait()

    # prefetch the next row-tile of the same image into the other slot
    @pl.when(t + 1 < num_rt)
    def _prefetch():
        fetch(t + 1, 1 - slot)

    # build the folded (176, tl) patch matrix: 11 lane-aligned dy-shifted slices of the window
    xw = xbuf[slot]                                               # (DXP, win)
    slab = jnp.concatenate(
        [xw[:, dy * wp: dy * wp + tl] for dy in range(K)], axis=0)  # (KD, tl)

    # single MXU matmul, f32 accumulation
    res = jnp.dot(w_ref[...], slab, preferred_element_type=jnp.float32)  # (C_OUT, tl)
    o_ref[0] = res.astype(o_ref.dtype)


def _vmem_estimate(th, wp, itemsize):
    tl = th * wp
    win = (th + 2 * PAD) * wp
    return (2 * DXP * win * itemsize      # double-buffered input window scratch
            + KD * tl * itemsize          # in-kernel (176, tl) slab
            + C_OUT * tl * 4              # f32 matmul result
            + 2 * C_OUT * tl * 4          # double-buffered f32 output block
            + C_OUT * 256 * itemsize)     # resident (lane-padded) weights


def _pick_tile_rows(h, wp, n_imgs, itemsize, target=20 << 20):
    # largest divisor of H whose per-step VMEM estimate fits the budget (v7x: 64 MiB physical)
    divs = [d for d in range(1, h + 1) if h % d == 0]
    fit = [d for d in divs if _vmem_estimate(d, wp, itemsize) <= target] or [1]
    th = max(fit)
    # v7x has 2 TensorCores: keep >= 2 independent grid steps when possible
    if n_imgs * (h // th) < 2:
        smaller = [d for d in fit if d < th]
        if smaller:
            th = max(smaller)
    return th


def lm_forward(x, w, *, compute_dtype=jnp.bfloat16, tile_rows=None):
    N, C, H, W = x.shape
    assert C == 1, "lm expects a single input channel"
    itemsize = jnp.dtype(compute_dtype).itemsize
    Wp = ((W + 127) // 128) * 128          # lane-aligned internal row stride
    Hp = H + 2 * PAD

    if tile_rows is None:
        tile_rows = _pick_tile_rows(H, Wp, N, itemsize)
    assert H % tile_rows == 0, "tile_rows must divide H"
    num_rt = H // tile_rows
    TL = tile_rows * Wp
    WIN = (tile_rows + 2 * PAD) * Wp

    # --- wrapper glue (pure data movement): pad + 11 x-shifted column banks, lane-padded row
    #     stride Wp, flattened row-major.  No per-tile halo duplication: the kernel DMAs
    #     overlapping windows straight out of this single un-duplicated array.
    xpad = jnp.pad(x[:, 0], ((0, 0), (PAD, PAD), (PAD, PAD)))            # (N, Hp, W+10)
    xb = jnp.stack([xpad[:, :, dx:dx + W] for dx in range(K)], axis=1)   # (N, 11, Hp, W)
    xb = jnp.pad(xb, ((0, 0), (0, DXP - K), (0, 0), (0, Wp - W)))        # (N, 16, Hp, Wp)
    xbf = xb.reshape(N, DXP, Hp * Wp).astype(compute_dtype)

    # folded lane-dense weights: (48, 11, 11) -> (48, 176), contraction index = dy*16 + dx
    wt = jnp.pad(w, ((0, 0), (0, 0), (0, DXP - K))).reshape(C_OUT, KD).astype(compute_dtype)

    kernel = functools.partial(_lm_kernel, wp=Wp, th=tile_rows)
    vmem_est = _vmem_estimate(tile_rows, Wp, itemsize)
    cost = pl.CostEstimate(
        flops=2 * N * H * W * C_OUT * K * K,
        transcendentals=0,
        bytes_accessed=int(xbf.size * itemsize + wt.size * itemsize + N * C_OUT * H * Wp * 4))

    out = pl.pallas_call(
        kernel,
        out_shape=jax.ShapeDtypeStruct((N, C_OUT, H * Wp), jnp.float32),
        grid_spec=pltpu.PrefetchScalarGridSpec(
            num_scalar_prefetch=0,
            grid=(N, num_rt),
            in_specs=[
                pl.BlockSpec(memory_space=pl.ANY),                 # banked image stays in HBM
                pl.BlockSpec((C_OUT, KD), lambda n, t: (0, 0)),    # resident folded weights
            ],
            out_specs=pl.BlockSpec((1, C_OUT, TL), lambda n, t: (n, 0, t)),
            scratch_shapes=[
                pltpu.VMEM((2, DXP, WIN), compute_dtype),          # double-buffered window
                pltpu.SemaphoreType.DMA((2,)),
            ]),
        compiler_params=pltpu.CompilerParams(
            dimension_semantics=("parallel", "arbitrary"),
            vmem_limit_bytes=int(min(48 << 20, max(32 << 20, 2 * vmem_est)))),
        cost_estimate=cost,
    )(xbf, wt)

    out = out.reshape(N, C_OUT, H, Wp)
    # columns [W, Wp) are exactly zero (zero-padded banks); slice is free when W % 128 == 0
    return out[:, :, :, :W] if Wp != W else out


if __name__ == "__main__":
    key = jax.random.PRNGKey(0)
    x = jax.random.normal(key, (2, 1, 16, 16), dtype=jnp.float32)
    w = _filter_bank()

    # pure-JAX reference (same semantics as the four torch conv2d + cat)
    ref = jax.lax.conv_general_dilated(
        x, w[:, None, :, :], window_strides=(1, 1),
        padding=((PAD, PAD), (PAD, PAD)),
        dimension_numbers=("NCHW", "OIHW", "NCHW"))

    # f32 operands, auto tile (whole-image row tile per image -> grid (2, 1))
    y32 = jax.block_until_ready(lm_forward(x, w, compute_dtype=jnp.float32))
    assert y32.shape == (2, C_OUT, 16, 16), y32.shape
    assert jnp.allclose(y32, ref, rtol=1e-4, atol=1e-4), float(jnp.max(jnp.abs(y32 - ref)))

    # f32, forced 8-row tiles: exercises the double-buffered halo-window DMA path (grid (2, 2))
    y32t = jax.block_until_ready(lm_forward(x, w, compute_dtype=jnp.float32, tile_rows=8))
    assert jnp.allclose(y32t, ref, rtol=1e-4, atol=1e-4), float(jnp.max(jnp.abs(y32t - ref)))

    # default bf16 operands / f32 MXU accumulation
    ybf = jax.block_until_ready(lm_forward(x, w))
    assert ybf.shape == (2, C_OUT, 16, 16), ybf.shape
    assert jnp.allclose(ybf, ref, rtol=1e-1, atol=1e-1), float(jnp.max(jnp.abs(ybf - ref)))

    print("KERNEL_OK")
</pallas_src>

<mosaic_0001>
module attributes {stable_mosaic.version = 11 : i64} {
  func.func @_lm_kernel(%arg0: i32, %arg1: i32, %arg2: memref<2x16x3328xf32, #tpu.memory_space<any>>, %arg3: memref<48x176xf32, #tpu.memory_space<vmem>>, %arg4: memref<1x48x2048xf32, #tpu.memory_space<vmem>>, %arg5: memref<2x16x3328xf32, #tpu.memory_space<vmem>>, %arg6: memref<2x!tpu.dma_semaphore, #tpu.memory_space<semaphore_mem>>) attributes {dimension_semantics = [#tpu.dimension_semantics<parallel>, #tpu.dimension_semantics<arbitrary>], iteration_bounds = array<i64: 2, 1>, scalar_prefetch = 0 : i64, scratch_operands = 2 : i64, tpu.core_type = #tpu.core_type<tc>, window_params = [{}, {pipeline_mode = #tpu.pipeline_mode<synchronous>, transform_indices = @transform_1, window_bounds = array<i64: 48, 176>}, {transform_indices = @transform_2, window_bounds = array<i64: 1, 48, 2048>}]} {
    %c0_i32 = arith.constant 0 : i32
    %0 = arith.cmpi eq, %arg1, %c0_i32 : i32
    %1 = arith.extui %0 : i1 to i32
    %c0_i32_0 = arith.constant 0 : i32
    %2 = arith.cmpi ne, %1, %c0_i32_0 : i32
    scf.if %2 {
      %c0_i32_17 = arith.constant 0 : i32
      %c0_i32_18 = arith.constant 0 : i32
      %c0_i32_19 = arith.constant 0 : i32
      %c0_i32_20 = arith.constant 0 : i32
      %44 = tpu.memref_slice %arg2[%arg0, %c0_i32_19, %c0_i32_20] : memref<2x16x3328xf32, #tpu.memory_space<any>> -> memref<1x16x3328xf32, #tpu.memory_space<any>>
      %45 = tpu.memref_squeeze %44 : memref<1x16x3328xf32, #tpu.memory_space<any>> -> memref<16x3328xf32, #tpu.memory_space<any>>
      %c0_i32_21 = arith.constant 0 : i32
      %c0_i32_22 = arith.constant 0 : i32
      %46 = tpu.memref_slice %arg5[%c0_i32_17, %c0_i32_21, %c0_i32_22] : memref<2x16x3328xf32, #tpu.memory_space<vmem>> -> memref<1x16x3328xf32, #tpu.memory_space<vmem>>
      %47 = tpu.memref_squeeze %46 : memref<1x16x3328xf32, #tpu.memory_space<vmem>> -> memref<16x3328xf32, #tpu.memory_space<vmem>>
      %48 = tpu.memref_slice %arg6[%c0_i32_18] : memref<2x!tpu.dma_semaphore, #tpu.memory_space<semaphore_mem>> -> memref<1x!tpu.dma_semaphore, #tpu.memory_space<semaphore_mem>>
      %49 = tpu.memref_squeeze %48 : memref<1x!tpu.dma_semaphore, #tpu.memory_space<semaphore_mem>> -> memref<!tpu.dma_semaphore, #tpu.memory_space<semaphore_mem>>
      tpu.enqueue_dma source(%45 : memref<16x3328xf32, #tpu.memory_space<any>>) target(%47 : memref<16x3328xf32, #tpu.memory_space<vmem>>) target_semaphore(%49 : memref<!tpu.dma_semaphore, #tpu.memory_space<semaphore_mem>>)
    } else {
    }
    %c2_i32 = arith.constant 2 : i32
    %c0_i32_1 = arith.constant 0 : i32
    %3 = arith.cmpi eq, %c2_i32, %c0_i32_1 : i32
    %c1_i32 = arith.constant 1 : i32
    %4 = arith.select %3, %c1_i32, %c2_i32 : i32
    %5 = arith.remsi %arg1, %4 : i32
    %c0_i32_2 = arith.constant 0 : i32
    %6 = arith.cmpi ne, %5, %c0_i32_2 : i32
    %c0_i32_3 = arith.constant 0 : i32
    %7 = arith.cmpi slt, %5, %c0_i32_3 : i32
    %c0_i32_4 = arith.constant 0 : i32
    %8 = arith.cmpi slt, %4, %c0_i32_4 : i32
    %9 = arith.xori %7, %8 : i1
    %10 = arith.andi %9, %6 : i1
    %11 = arith.addi %5, %4 : i32
    %12 = arith.select %10, %11, %5 : i32
    %c2048_i32 = arith.constant 2048 : i32
    %13 = arith.muli %arg1, %c2048_i32 : i32
    %c0_i32_5 = arith.constant 0 : i32
    %14 = tpu.memref_slice %arg2[%arg0, %c0_i32_5, %13] : memref<2x16x3328xf32, #tpu.memory_space<any>> -> memref<1x16x3328xf32, #tpu.memory_space<any>>
    %15 = tpu.memref_squeeze %14 : memref<1x16x3328xf32, #tpu.memory_space<any>> -> memref<16x3328xf32, #tpu.memory_space<any>>
    %c0_i32_6 = arith.constant 0 : i32
    %c0_i32_7 = arith.constant 0 : i32
    %16 = tpu.memref_slice %arg5[%12, %c0_i32_6, %c0_i32_7] : memref<2x16x3328xf32, #tpu.memory_space<vmem>> -> memref<1x16x3328xf32, #tpu.memory_space<vmem>>
    %17 = tpu.memref_squeeze %16 : memref<1x16x3328xf32, #tpu.memory_space<vmem>> -> memref<16x3328xf32, #tpu.memory_space<vmem>>
    %18 = tpu.memref_slice %arg6[%12] : memref<2x!tpu.dma_semaphore, #tpu.memory_space<semaphore_mem>> -> memref<1x!tpu.dma_semaphore, #tpu.memory_space<semaphore_mem>>
    %19 = tpu.memref_squeeze %18 : memref<1x!tpu.dma_semaphore, #tpu.memory_space<semaphore_mem>> -> memref<!tpu.dma_semaphore, #tpu.memory_space<semaphore_mem>>
    tpu.wait_dma2 semaphore(%19 : memref<!tpu.dma_semaphore, #tpu.memory_space<semaphore_mem>>) src(%15 : memref<16x3328xf32, #tpu.memory_space<any>>) dst(%17 : memref<16x3328xf32, #tpu.memory_space<vmem>>)
    %c1_i32_8 = arith.constant 1 : i32
    %20 = arith.addi %arg1, %c1_i32_8 : i32
    %c1_i32_9 = arith.constant 1 : i32
    %21 = arith.cmpi slt, %20, %c1_i32_9 : i32
    %22 = arith.extui %21 : i1 to i32
    %c0_i32_10 = arith.constant 0 : i32
    %23 = arith.cmpi ne, %22, %c0_i32_10 : i32
    scf.if %23 {
      %c1_i32_17 = arith.constant 1 : i32
      %44 = arith.addi %arg1, %c1_i32_17 : i32
      %c1_i32_18 = arith.constant 1 : i32
      %45 = arith.subi %c1_i32_18, %12 : i32
      %c2048_i32_19 = arith.constant 2048 : i32
      %46 = arith.muli %44, %c2048_i32_19 : i32
      %c0_i32_20 = arith.constant 0 : i32
      %47 = tpu.memref_slice %arg2[%arg0, %c0_i32_20, %46] : memref<2x16x3328xf32, #tpu.memory_space<any>> -> memref<1x16x3328xf32, #tpu.memory_space<any>>
      %48 = tpu.memref_squeeze %47 : memref<1x16x3328xf32, #tpu.memory_space<any>> -> memref<16x3328xf32, #tpu.memory_space<any>>
      %c0_i32_21 = arith.constant 0 : i32
      %c0_i32_22 = arith.constant 0 : i32
      %49 = tpu.memref_slice %arg5[%45, %c0_i32_21, %c0_i32_22] : memref<2x16x3328xf32, #tpu.memory_space<vmem>> -> memref<1x16x3328xf32, #tpu.memory_space<vmem>>
      %50 = tpu.memref_squeeze %49 : memref<1x16x3328xf32, #tpu.memory_space<vmem>> -> memref<16x3328xf32, #tpu.memory_space<vmem>>
      %51 = tpu.memref_slice %arg6[%45] : memref<2x!tpu.dma_semaphore, #tpu.memory_space<semaphore_mem>> -> memref<1x!tpu.dma_semaphore, #tpu.memory_space<semaphore_mem>>
      %52 = tpu.memref_squeeze %51 : memref<1x!tpu.dma_semaphore, #tpu.memory_space<semaphore_mem>> -> memref<!tpu.dma_semaphore, #tpu.memory_space<semaphore_mem>>
      tpu.enqueue_dma source(%48 : memref<16x3328xf32, #tpu.memory_space<any>>) target(%50 : memref<16x3328xf32, #tpu.memory_space<vmem>>) target_semaphore(%52 : memref<!tpu.dma_semaphore, #tpu.memory_space<semaphore_mem>>)
    } else {
    }
    %24 = arith.index_cast %12 : i32 to index
    %c0 = arith.constant 0 : index
    %c0_11 = arith.constant 0 : index
    %25 = vector.load %arg5[%24, %c0, %c0_11] : memref<2x16x3328xf32, #tpu.memory_space<vmem>>, vector<1x16x3328xf32>
    %26 = vector.shape_cast %25 : vector<1x16x3328xf32> to vector<16x3328xf32>
    %27 = vector.extract_strided_slice %26 {offsets = [0, 0], sizes = [16, 2048], strides = [1, 1]} : vector<16x3328xf32> to vector<16x2048xf32>
    %28 = vector.extract_strided_slice %26 {offsets = [0, 128], sizes = [16, 2048], strides = [1, 1]} : vector<16x3328xf32> to vector<16x2048xf32>
    %29 = vector.extract_strided_slice %26 {offsets = [0, 256], sizes = [16, 2048], strides = [1, 1]} : vector<16x3328xf32> to vector<16x2048xf32>
    %30 = vector.extract_strided_slice %26 {offsets = [0, 384], sizes = [16, 2048], strides = [1, 1]} : vector<16x3328xf32> to vector<16x2048xf32>
    %31 = vector.extract_strided_slice %26 {offsets = [0, 512], sizes = [16, 2048], strides = [1, 1]} : vector<16x3328xf32> to vector<16x2048xf32>
    %32 = vector.extract_strided_slice %26 {offsets = [0, 640], sizes = [16, 2048], strides = [1, 1]} : vector<16x3328xf32> to vector<16x2048xf32>
    %33 = vector.extract_strided_slice %26 {offsets = [0, 768], sizes = [16, 2048], strides = [1, 1]} : vector<16x3328xf32> to vector<16x2048xf32>
    %34 = vector.extract_strided_slice %26 {offsets = [0, 896], sizes = [16, 2048], strides = [1, 1]} : vector<16x3328xf32> to vector<16x2048xf32>
    %35 = vector.extract_strided_slice %26 {offsets = [0, 1024], sizes = [16, 2048], strides = [1, 1]} : vector<16x3328xf32> to vector<16x2048xf32>
    %36 = vector.extract_strided_slice %26 {offsets = [0, 1152], sizes = [16, 2048], strides = [1, 1]} : vector<16x3328xf32> to vector<16x2048xf32>
    %37 = vector.extract_strided_slice %26 {offsets = [0, 1280], sizes = [16, 2048], strides = [1, 1]} : vector<16x3328xf32> to vector<16x2048xf32>
    %38 = tpu.concatenate %27, %28, %29, %30, %31, %32, %33, %34, %35, %36, %37 in 0 : vector<16x2048xf32>, vector<16x2048xf32>, vector<16x2048xf32>, vector<16x2048xf32>, vector<16x2048xf32>, vector<16x2048xf32>, vector<16x2048xf32>, vector<16x2048xf32>, vector<16x2048xf32>, vector<16x2048xf32>, vector<16x2048xf32> -> vector<176x2048xf32>
    %c0_12 = arith.constant 0 : index
    %c0_13 = arith.constant 0 : index
    %39 = vector.load %arg3[%c0_12, %c0_13] : memref<48x176xf32, #tpu.memory_space<vmem>>, vector<48x176xf32>
    %cst = arith.constant dense<0.000000e+00> : vector<48x2048xf32>
    %40 = tpu.matmul %39, %38, %cst {dimension_numbers = #tpu.dot_dimension_numbers<[1], [0], [0], [1], [0, 0, 1, 1], [], []>} : vector<48x176xf32>, vector<176x2048xf32>, vector<48x2048xf32> -> vector<48x2048xf32>
    %c0_14 = arith.constant 0 : index
    %c0_15 = arith.constant 0 : index
    %c0_16 = arith.constant 0 : index
    %41 = vector.load %arg4[%c0_14, %c0_15, %c0_16] : memref<1x48x2048xf32, #tpu.memory_space<vmem>>, vector<1x48x2048xf32>
    %42 = vector.shape_cast %41 : vector<1x48x2048xf32> to vector<48x2048xf32>
    %43 = vector.shape_cast %40 : vector<48x2048xf32> to vector<1x48x2048xf32>
    tpu.vector_store %arg4[%c0_14, %c0_15, %c0_16], %43 {strides = array<i32>} : memref<1x48x2048xf32, #tpu.memory_space<vmem>>, vector<1x48x2048xf32>,
    return
  }
  func.func @transform_1(%arg0: i32, %arg1: i32) -> (i32, i32) {
    %c0_i32 = arith.constant 0 : i32
    %c0_i32_0 = arith.constant 0 : i32
    %c0_i32_1 = arith.constant 0 : i32
    return %c0_i32, %c0_i32_0 : i32, i32
  }
  func.func @transform_2(%arg0: i32, %arg1: i32) -> (i32, i32, i32) {
    %c0_i32 = arith.constant 0 : i32
    %c0_i32_0 = arith.constant 0 : i32
    return %arg0, %c0_i32, %arg1 : i32, i32, i32
  }
}

</mosaic_0001>

<bundles_post_ra>
// kernel: tpu_custom_call.1
= control target key start
LH: loop header
LB: loop body
LE: loop exit
PB: predicated region body
PF: predicated region fallthrough
CT: control target
= control target key end

     0   :  { %7 = vsyncpa [#allocation5], 0  ;;  %s2391_s0 = inlined_call_operand.hbm [shape: f32[2,16,3328], index: 0, kind: input, shape index: {}]   ;;  %s2392_s1 = inlined_call_operand.hbm [shape: f32[48,176], index: 1, kind: input, shape index: {}]   ;;  %s2393_s2 = inlined_call_operand.hbm [shape: f32[2,48,2048], index: 2, kind: output, shape index: {}]  }
   0x1   :  { %8 = vsyncpa [#allocation6], 0 }
   0x2   :  { %10 = vsyncpa [#allocation6 + $0x1], 0  ;;  %s1584_s9 = smov 0   ;;  %s1586_s10 = smov 0  }
   0x3   :  { %s1588_s11 = smov 0   ;;  %s1590_s12 = smov 0  }
   0x4   :  { %s1592_s13 = smov 0   ;;  %s1594_s14 = smov 0  }
   0x5 LB: > { %s1293_s15 = sadd.s32 4294967295, %s1560_s14   ;;  %s1294_s16 = sadd.s32 4294967294, %s1560_s14   ;;  %s1560_s14 = sphi %s1594_s14, %s16_s14   ;;  %s1556_s13 = sphi %s1592_s13, %s2402_s13   ;;  %s1552_s12 = sphi %s1590_s12, %s2401_s12   ;;  %s1548_s11 = sphi %s1588_s11, %s2400_s11   ;;  %s1544_s10 = sphi %s1586_s10, %s2399_s10   ;;  %s1540_s9 = sphi %s1584_s9, %s2398_s9  }
   0x6   : > { %s28_s17 = sadd.s32 1, %s1556_s13  ;;  %s58_s18 = sadd.s32 1, %s1548_s11 }
   0x7   : > { %p30_p0 = scmp.ge.s32.totalorder %s28_s17, 2  ;;  %p68_p1 = scmp.ne.s32.totalorder %s1548_s11, %s1544_s10 }
   0x8   : > { %p69_p2 = scmp.eq.s32.totalorder %s1293_s15, 1  ;;  %p74_p3 = scmp.ne.s32.totalorder %s1544_s10, %s1540_s9 }
   0x9   : > { %s2404_s17 = smov (%p30_p0, %s28_s17), 0  ;;  %p75_p5 = scmp.eq.s32.totalorder %s1294_s16, 1 }
   0xa   : > { %p1624_p4 = por %p69_p2, %p68_p1  ;;  %s53_s20 = ssub.s32 %s1556_s13, %s2404_s17 }
   0xb   : > { %p1295_p6 = scmp.ge.s32.totalorder %s1560_s14, 1  ;;  %p56_p7 = scmp.eq.s32.totalorder %s53_s20, 0 }
   0xc   : > { %p1631_p8 = por %p75_p5, %p74_p3  ;;  %p82_p9 = scmp.lt.s32.totalorder %s1560_s14, 3 }
   0xd   : > { %s1637_s22 = scalar_select %p56_p7, %s1548_s11, %s58_s18  }
   0xe   : > { %p1639_p10 = pnand %p1295_p6, %p82_p9  ;;  %p1643_p11 = scmp.eq.s32.totalorder %s1293_s15, 0 }
   0xf   : > { %s1562_s25 = smov [#allocation4]  }
  0x10   : > { %p1365_p12 = pneg %p1639_p10  ;;  %s94_s26 = sshll.u32 %s1562_s25, 4  ;;  %s95_s26 = int_to_ptr.vmem [resolvable:$true] %s94_s26 }
  0x11   : > { %s1441_s27 = scalar_lea.vmem %s95_s26, 1536  ;;  %p1449_p5 = scmp.lt.s32.totalorder %s95_s26, %s95_s26 }
  0x12   : > { %p1366_p13 = pnand %p1643_p11, %p1365_p12  ;;  %p1442_p1 = scmp.ne.s32.totalorder %s95_s26, %s1441_s27 }
  0x13   : > { %p1450_p6 = scmp.lt.s32.totalorder %s1441_s27, %s1441_s27 }
  0x14   : > { %p1432_p0 = pneg %p1366_p13 }
  0x15   : > { %p1451_p7 = por %p1450_p6, %p1449_p5 }
  0x16   : > { %p1444_p2 = pnand %p1442_p1, %p1432_p0 }
  0x18   : > { %p1445_p3 = pneg %p1444_p2 }
  0x1a   : > { %p1452_p9 = pnand %p1451_p7, %p1445_p3 }
  0x1c   : > { %1455 = shalt.err (!%p1452_p9)
}
  0x1d   : > { %s1563_s28 = smov 256   ;;  %s1564_s29 = smov 16  }
  0x1e   : > { %1368 = dma.hbm_to_vmem [thread:$0]  (!%p1366_p13), %s2392_s1, 1536, %s95_s26, [#allocation5], %s1563_s28, %s1563_s28, %s1564_s29  }
  0x1f   : > { %110 = sbr.rel (%p1639_p10) target bundleno = 504 (0x1f8), region = 24 }
  0x24   : > { %1529 = dma.done.wait (%p1643_p11), [#allocation5], 1536  }
  0x25   : > { %1531 = vsyncadd (%p1643_p11), [#allocation5], 4294965760  ;;  %s122_s4 = sand.u32 1, %s1544_s10   ;;  %s1354_s5 = smul.u32 6656, %s1552_s12 }
  0x26   : > { %s1357_s6 = smul.u32 768, %s122_s4  ;;  %s1565_s16 = smov [#allocation2]  }
  0x27   : > { %s132_s15 = scalar_lea.hbm %s2391_s0, %s1354_s5  ;;  %s140_s18 = sshll.u32 %s1565_s16, 4  ;;  %s141_s18 = int_to_ptr.vmem [resolvable:$true] %s140_s18 }
  0x28   : > { %s1456_s20 = scalar_lea.hbm %s132_s15, 6656  ;;  %s1458_s24 = scalar_lea.hbm %s2391_s0, 13312 }
  0x29   : > { %p1457_p10 = scmp.ne.s32.totalorder %s132_s15, %s1456_s20  ;;  %p1459_p11 = scmp.lt.s32.totalorder %s132_s15, %s2391_s0 }
  0x2a   : > { %p1460_p12 = scmp.lt.s32.totalorder %s1458_s24, %s1456_s20 }
  0x2c   : > { %p1461_p13 = por %p1460_p12, %p1459_p11 }
  0x2e   : > { %p1462_p0 = pnand %p1461_p13, %p1457_p10 }
  0x30   : > { %1465 = shalt.err (!%p1462_p0)  }
  0x31   : > { %s1466_s28 = scalar_lea.vmem %s141_s18, 6656  ;;  %s1470_s29 = scalar_lea.vmem %s141_s18, 13312 }
  0x32   : > { %p1467_p1 = scmp.ne.s32.totalorder %s141_s18, %s1466_s28  ;;  %p1471_p2 = scmp.lt.s32.totalorder %s141_s18, %s141_s18 }
  0x33   : > { %p1472_p3 = scmp.lt.s32.totalorder %s1470_s29, %s1466_s28 }
  0x35   : > { %p1473_p5 = por %p1472_p3, %p1471_p2 }
  0x37   : > { %p1474_p6 = pnand %p1473_p5, %p1467_p1 }
  0x39   : > { %1477 = shalt.err (!%p1474_p6)  }
  0x3a   : > { %143 = dma.hbm_to_vmem [thread:$0]  %s132_s15, 6656, %s141_s18, [#allocation3] }
  0x3b   : > { %s1673_s30 = scalar_lea.vmem [#allocation7], %s1357_s6 }
  0x3c   : > { %1532 = dma.done.wait [#allocation3], 6656 }
  0x3d   : > { %1533 = vsyncadd [#allocation3], 4294960640  ;;  %v1675_v0 = vld [vmem:[#allocation2 + $0x110] sm:$0xff]  ;;  %v1677_v1 = vld [vmem:[#allocation2 + $0x120] sm:$0xff]  ;;  %vm256_vm0 = vcmask 392192   ;;  %s1358_s3 = smul.u32 12288, %s1552_s12 }
  0x3e   : > { %v1679_v2 = vld [vmem:[#allocation2 + $0x108] sm:$0xff]  ;;  %275 = vmatprep.subr.mxu0 %v1675_v0  ;;  %376 = vmatprep.subr.mxu1 %v1677_v1  ;;  %v1683_v3 = vld [vmem:[#allocation2 + $0x118] sm:$0xff]  ;;  %v1685_v4 = vld [vmem:[#allocation2 + $0x40] sm:$0xff]  ;;  %s1195_s5 = sshll.u32 %s1673_s30, 4  ;;  %s2346_s12 = scalar_lea.sflag [#allocation6], %s122_s4  ;;  %s2338_s5 = int_to_ptr.vmem [resolvable:$true] %s1195_s5 }
  0x3f   : > { %v1687_v5 = vld [vmem:[#allocation2 + $0x50] sm:$0xff]  ;;  %276 = vmatpush1.msra.mxu0 %v1679_v2  ;;  %377 = vmatpush1.msra.mxu1 %v1683_v3  ;;  %v1691_v6 = vld [vmem:[#allocation2 + $0x38] sm:$0xff]  ;;  %v1693_v7 = vld [vmem:[#allocation2 + $0x48] sm:$0xff]  ;;  %s2336_s8 = scalar_lea.hbm %s2393_s2, %s1358_s3  ;;  %s1478_s15 = scalar_lea.vmem %s2338_s5, 12288 }
  0x40   : > { %277 = vmatprep.subr.mxu0 %v1685_v4  ;;  %378 = vmatprep.subr.mxu1 %v1687_v5  ;;  %v1697_v8 = vld [vmem:[#allocation2 + $0x100] sm:$0xff]  ;;  %v1703_v9 = vld [vmem:[#allocation2 + $0x30] sm:$0xff]  ;;  %v1709_v10 = vld [vmem:[#allocation2 + $0xf8] sm:$0xff]  ;;  %p1479_p7 = scmp.ne.s32.totalorder %s2338_s5, %s1478_s15  ;;  %s1566_s16 = smov [#allocation7]  }
  0x41   : > { %278 = vmatpush1.msra.mxu0 %v1691_v6  ;;  %379 = vmatpush1.msra.mxu1 %v1693_v7  ;;  %v1715_v11 = vld [vmem:[#allocation2 + $0x28] sm:$0xff]  ;;  %v1721_v12 = vld [vmem:[#allocation2 + $0xf0] sm:$0xff]  ;;  %v1727_v13 = vld [vmem:[#allocation2 + $0x20] sm:$0xff]  ;;  %s1482_s18 = sshll.u32 %s1566_s16, 4  ;;  %s1483_s18 = int_to_ptr.vmem [resolvable:$false] %s1482_s18 }
  0x42   : > { %279 = vmatprep.subr.mxu0 %v1679_v2  ;;  %380 = vmatprep.subr.mxu1 %v1683_v3  ;;  %v221_v14 = vld [vmem:[#allocation2 + $0xe8] sm:$0xff]  ;;  %v195_v15 = vld [vmem:[#allocation2 + $0x18] sm:$0xff]  ;;  %v220_v16 = vld [vmem:[#allocation2 + $0xe0] sm:$0xff]  ;;  %p1480_p9 = pnand %p1479_p7, %p1624_p4  ;;  %s1484_s20 = scalar_lea.vmem %s1483_s18, 24576 }
  0x43   : > { %280 = vmatpush1.msra.mxu0 %v1697_v8  ;;  %381 = vmatpush1.msra.mxu1 %v1675_v0  ;;  %v194_v17 = vld [vmem:[#allocation2 + $0x10] sm:$0xff]  ;;  %v219_v18 = vld [vmem:[#allocation2 + $0xd8] sm:$0xff]  ;;  %v193_v19 = vld [vmem:[#allocation2 + $0x8] sm:$0xff]  ;;  %p1485_p11 = scmp.lt.s32.totalorder %s2338_s5, %s1483_s18  ;;  %p1486_p12 = scmp.lt.s32.totalorder %s1484_s20, %s1478_s15 }
  0x44   : > { %281 = vmatprep.subr.mxu0 %v1691_v6  ;;  %382 = vmatprep.subr.mxu1 %v1693_v7  ;;  %v218_v20 = vld [vmem:[#allocation2 + $0xd0] sm:$0xff]  ;;  %v192_v21 = vld [vmem:[#allocation2] sm:$0xff]  ;;  %v1747_v22 = vld [vmem:[#allocation2 + $0x128] sm:$0xff]  ;;  %p1481_p10 = pneg %p1480_p9 }
  0x45   : > { %282 = vmatpush1.msra.mxu0 %v1703_v9  ;;  %383 = vmatpush1.msra.mxu1 %v1685_v4  ;;  %v1749_v23 = vld [vmem:[#allocation2 + $0x138] sm:$0xff]  ;;  %v1751_v24 = vld [vmem:[#allocation2 + $0x130] sm:$0xff]  ;;  %v1755_v26 = vld [vmem:[#allocation2 + $0x68] sm:$0xff]  ;;  %p1487_p13 = por %p1486_p12, %p1485_p11 }
  0x46   : > { %283 = vmatprep.subr.mxu0 %v1697_v8  ;;  %384 = vmatprep.subr.mxu1 %v1675_v0  ;;  %v1753_v25 = vld [vmem:[#allocation2 + $0x58] sm:$0xff]  ;;  %v1759_v27 = vld [vmem:[#allocation2 + $0x60] sm:$0xff]  ;;  %v1777_v28 = vld [vmem:[#allocation4 + $0x8] sm:$0xff] }
  0x47   : > { %284 = vmatpush1.msra.mxu0 %v1709_v10  ;;  %385 = vmatpush1.msra.mxu1 %v1679_v2  ;;  %v1783_v29 = vld [vmem:[#allocation4] sm:$0xff]  ;;  %v1795_v31 = vld [vmem:[#allocation2 + $0x70] sm:$0xff]  ;;  %v1837_v32 = vld [vmem:[#allocation4 + $0x18] sm:$0xff]  ;;  %p1488_p0 = pnand %p1487_p13, %p1481_p10 }
  0x48   : > { %285 = vmatprep.subr.mxu0 %v1703_v9  ;;  %386 = vmatprep.subr.mxu1 %v1685_v4  ;;  %v1788_v30 = vld [vmem:[#allocation2 + $0x140] sm:$0xff]  ;;  %v1843_v33 = vld [vmem:[#allocation4 + $0x10] sm:$0xff]  ;;  %v1855_v34 = vld [vmem:[#allocation4 + $0x28] sm:$0xff] }
  0x49   : > { %286 = vmatpush1.msra.mxu0 %v1715_v11  ;;  %387 = vmatpush1.msra.mxu1 %v1691_v6  ;;  %v1861_v35 = vld [vmem:[#allocation4 + $0x20] sm:$0xff]  ;;  %v1873_v36 = vld [vmem:[#allocation4 + $0x38] sm:$0xff]  ;;  %v1879_v37 = vld [vmem:[#allocation4 + $0x30] sm:$0xff] }
  0x4a   : > { %287 = vmatprep.subr.mxu0 %v1709_v10  ;;  %388 = vmatprep.subr.mxu1 %v1679_v2  ;;  %v1887_v38 = vld [vmem:[#allocation2 + $0x148] sm:$0xff]  ;;  %v1889_v39 = vld [vmem:[#allocation2 + $0x158] sm:$0xff]  ;;  %v1893_v40 = vld [vmem:[#allocation2 + $0x150] sm:$0xff] }
  0x4b   : > { %288 = vmatpush1.msra.mxu0 %v1721_v12  ;;  %389 = vmatpush1.msra.mxu1 %v1697_v8  ;;  %v1897_v41 = vld [vmem:[#allocation4 + $0x48] sm:$0xff]  ;;  %v1901_v42 = vld [vmem:[#allocation2 + $0x78] sm:$0xff]  ;;  %v1907_v44 = vld [vmem:[#allocation4 + $0x40] sm:$0xff] }
  0x4c   : > { %289 = vmatprep.subr.mxu0 %v1715_v11  ;;  %390 = vmatprep.subr.mxu1 %v1691_v6  ;;  %v1903_v43 = vld [vmem:[#allocation2 + $0x88] sm:$0xff]  ;;  %v1913_v45 = vld [vmem:[#allocation2 + $0x80] sm:$0xff]  ;;  %v1921_v46 = vld [vmem:[#allocation4 + $0x58] sm:$0xff] }
  0x4d   : > { %290 = vmatpush1.msra.mxu0 %v1727_v13  ;;  %391 = vmatpush1.msra.mxu1 %v1703_v9  ;;  %v1927_v47 = vld [vmem:[#allocation4 + $0x50] sm:$0xff]  ;;  %v1948_v48 = vld [vmem:[#allocation2 + $0x160] sm:$0xff]  ;;  %v2035_v50 = vld [vmem:[#allocation2 + $0x168] sm:$0xff] }
  0x4e   : > { %291 = vmatprep.subr.mxu0 %v1721_v12  ;;  %392 = vmatprep.subr.mxu1 %v1697_v8  ;;  %v1955_v49 = vld [vmem:[#allocation2 + $0x90] sm:$0xff]  ;;  %v2037_v51 = vld [vmem:[#allocation2 + $0x178] sm:$0xff]  ;;  %v2049_v54 = vld [vmem:[#allocation2 + $0xa8] sm:$0xff] }
  0x4f   : > { %292 = vmatpush1.msra.mxu0 %v221_v14  ;;  %393 = vmatpush1.msra.mxu1 %v1709_v10  ;;  %v2041_v52 = vld [vmem:[#allocation2 + $0x170] sm:$0xff]  ;;  %v2047_v53 = vld [vmem:[#allocation2 + $0x98] sm:$0xff]  ;;  %v2057_v55 = vld [vmem:[#allocation2 + $0xa0] sm:$0xff] }
  0x50   : > { %293 = vmatprep.subr.mxu0 %v1727_v13  ;;  %394 = vmatprep.subr.mxu1 %v1703_v9  ;;  %v2088_v56 = vld [vmem:[#allocation2 + $0x180] sm:$0xff]  ;;  %v2095_v57 = vld [vmem:[#allocation2 + $0xb0] sm:$0xff]  ;;  %v241_v58 = vld [vmem:[#allocation2 + $0x188] sm:$0xff] }
  0x51   : > { %294 = vmatpush1.msra.mxu0 %v195_v15  ;;  %395 = vmatpush1.msra.mxu1 %v1715_v11  ;;  %v243_v59 = vld [vmem:[#allocation2 + $0x198] sm:$0xff]  ;;  %v242_v60 = vld [vmem:[#allocation2 + $0x190] sm:$0xff]  ;;  %v217_v62 = vld [vmem:[#allocation2 + $0xc8] sm:$0xff] }
  0x52   : > { %295 = vmatprep.subr.mxu0 %v221_v14  ;;  %396 = vmatprep.subr.mxu1 %v1709_v10  ;;  %v215_v61 = vld [vmem:[#allocation2 + $0xb8] sm:$0xff]  ;;  %v216_v63 = vld [vmem:[#allocation2 + $0xc0] sm:$0xff] }
  0x53   : > { %296 = vmatpush1.msra.mxu0 %v220_v16  ;;  %397 = vmatpush1.msra.mxu1 %v1721_v12 }
  0x54   : > { %297 = vmatprep.subr.mxu0 %v195_v15  ;;  %398 = vmatprep.subr.mxu1 %v1715_v11 }
  0x55   : > { %298 = vmatpush1.msra.mxu0 %v194_v17  ;;  %399 = vmatpush1.msra.mxu1 %v1727_v13 }
  0x56   : > { %299 = vmatprep.subr.mxu0 %v220_v16  ;;  %400 = vmatprep.subr.mxu1 %v1721_v12 }
  0x57   : > { %300 = vmatpush1.msra.mxu0 %v219_v18  ;;  %401 = vmatpush1.msra.mxu1 %v221_v14 }
  0x58   : > { %301 = vmatprep.subr.mxu0 %v194_v17  ;;  %402 = vmatprep.subr.mxu1 %v1727_v13 }
  0x59   : > { %302 = vmatpush1.msra.mxu0 %v193_v19  ;;  %403 = vmatpush1.msra.mxu1 %v195_v15 }
  0x5a   : > { %303 = vmatprep.subr.mxu0 %v219_v18  ;;  %404 = vmatprep.subr.mxu1 %v221_v14 }
  0x5b   : > { %304 = vmatpush1.msra.mxu0 %v218_v20  ;;  %405 = vmatpush1.msra.mxu1 %v220_v16 }
  0x5c   : > { %305 = vmatprep.subr.mxu0 %v193_v19  ;;  %406 = vmatprep.subr.mxu1 %v195_v15 }
  0x5d   : > { %306 = vmatpush1.msra.mxu0 %v192_v21  ;;  %407 = vmatpush1.msra.mxu1 %v194_v17 }
  0x5e   : > { %327 = vmatprep.subr.mxu0 %v1747_v22  ;;  %428 = vmatprep.subr.mxu1 %v1749_v23 }
  0x5f   : > { %328 = vmatpush2.msra.mxu0 %v1677_v1  ;;  %429 = vmatpush2.msra.mxu1 %v1751_v24 }
  0x60   : > { %329 = vmatprep.subr.mxu0 %v1753_v25  ;;  %430 = vmatprep.subr.mxu1 %v1755_v26 }
  0x61   : > { %330 = vmatpush2.msra.mxu0 %v1687_v5  ;;  %431 = vmatpush2.msra.mxu1 %v1759_v27 }
  0x62   : > { %331 = vmatprep.subr.mxu0 %v1677_v1  ;;  %432 = vmatprep.subr.mxu1 %v1751_v24 }
  0x63   : > { %332 = vmatpush2.msra.mxu0 %v1683_v3  ;;  %433 = vmatpush2.msra.mxu1 %v1747_v22 }
  0x64   : > { %333 = vmatprep.subr.mxu0 %v1687_v5  ;;  %434 = vmatprep.subr.mxu1 %v1759_v27 }
  0x65   : > { %334 = vmatpush2.msra.mxu0 %v1693_v7  ;;  %435 = vmatpush2.msra.mxu1 %v1753_v25 }
  0x66   : > { %335 = vmatprep.subr.mxu0 %v1683_v3  ;;  %436 = vmatprep.subr.mxu1 %v1747_v22 }
  0x67   : > { %336 = vmatpush2.msra.mxu0 %v1675_v0  ;;  %437 = vmatpush2.msra.mxu1 %v1677_v1 }
  0x68   : > { %337 = vmatprep.subr.mxu0 %v1693_v7  ;;  %438 = vmatprep.subr.mxu1 %v1753_v25 }
  0x69   : > { %338 = vmatpush2.msra.mxu0 %v1685_v4  ;;  %1301 = vmatprep.mubr.msk.f32.mxu0 %vm256_vm0, %v1777_v28 }
  0x6a   : > { %439 = vmatpush2.msra.mxu1 %v1687_v5  ;;  %1307 = vmatprep.mubr.msk.f32.mxu1 %vm256_vm0, %v1777_v28 }
  0x6b   : > { %340 = vmatmul.mubr.f32.vlgmr.msra.gmra.mxu0 %v1783_v29  ;;  %441 = vmatmul.mubr.f32.vlgmr.msra.gmra.mxu1 %v1783_v29 }
  0x6c   : > { %477 = vmatprep.subr.mxu0 %v1751_v24  ;;  %578 = vmatprep.subr.mxu1 %v1788_v30 }
  0x6d   : > { %478 = vmatpush1.msra.mxu0 %v1747_v22  ;;  %579 = vmatpush1.msra.mxu1 %v1749_v23 }
  0x6e   : > { %479 = vmatprep.subr.mxu0 %v1759_v27  ;;  %580 = vmatprep.subr.mxu1 %v1795_v31 }
  0x6f   : > { %480 = vmatpush1.msra.mxu0 %v1753_v25  ;;  %581 = vmatpush1.msra.mxu1 %v1755_v26 }
  0x70   : > { %481 = vmatprep.subr.mxu0 %v1747_v22  ;;  %582 = vmatprep.subr.mxu1 %v1749_v23 }
  0x71   : > { %482 = vmatpush1.msra.mxu0 %v1677_v1  ;;  %583 = vmatpush1.msra.mxu1 %v1751_v24 }
  0x72   : > { %483 = vmatprep.subr.mxu0 %v1753_v25  ;;  %584 = vmatprep.subr.mxu1 %v1755_v26 }
  0x73   : > { %484 = vmatpush1.msra.mxu0 %v1687_v5  ;;  %585 = vmatpush1.msra.mxu1 %v1759_v27 }
  0x74   : > { %485 = vmatprep.subr.mxu0 %v1677_v1  ;;  %586 = vmatprep.subr.mxu1 %v1751_v24 }
  0x75   : > { %486 = vmatpush1.msra.mxu0 %v1683_v3  ;;  %587 = vmatpush1.msra.mxu1 %v1747_v22 }
  0x76   : > { %487 = vmatprep.subr.mxu0 %v1687_v5  ;;  %588 = vmatprep.subr.mxu1 %v1759_v27 }
  0x77   : > { %488 = vmatpush1.msra.mxu0 %v1693_v7  ;;  %589 = vmatpush1.msra.mxu1 %v1753_v25 }
  0x78   : > { %489 = vmatprep.subr.mxu0 %v1683_v3  ;;  %590 = vmatprep.subr.mxu1 %v1747_v22 }
  0x79   : > { %490 = vmatpush1.msra.mxu0 %v1675_v0  ;;  %591 = vmatpush1.msra.mxu1 %v1677_v1 }
  0x7a   : > { %491 = vmatprep.subr.mxu0 %v1693_v7  ;;  %592 = vmatprep.subr.mxu1 %v1753_v25 }
  0x7b   : > { %492 = vmatpush1.msra.mxu0 %v1685_v4  ;;  %593 = vmatpush1.msra.mxu1 %v1687_v5 }
  0x7c   : > { %493 = vmatprep.subr.mxu0 %v1675_v0  ;;  %594 = vmatprep.subr.mxu1 %v1677_v1 }
  0x7d   : > { %494 = vmatpush1.msra.mxu0 %v1679_v2  ;;  %595 = vmatpush1.msra.mxu1 %v1683_v3 }
  0x7e   : > { %495 = vmatprep.subr.mxu0 %v1685_v4  ;;  %596 = vmatprep.subr.mxu1 %v1687_v5 }
  0x7f   : > { %496 = vmatpush1.msra.mxu0 %v1691_v6  ;;  %597 = vmatpush1.msra.mxu1 %v1693_v7 }
  0x80   : > { %497 = vmatprep.subr.mxu0 %v1679_v2  ;;  %598 = vmatprep.subr.mxu1 %v1683_v3 }
  0x81   : > { %498 = vmatpush1.msra.mxu0 %v1697_v8  ;;  %599 = vmatpush1.msra.mxu1 %v1675_v0 }
  0x82   : > { %1302 = vmatprep.mubr.msk.f32.mxu0 %vm256_vm0, %v1837_v32  ;;  %1308 = vmatprep.mubr.msk.f32.mxu1 %vm256_vm0, %v1837_v32 }
  0x83   : > { %499 = vmatprep.subr.mxu0 %v1691_v6  ;;  %600 = vmatprep.subr.mxu1 %v1693_v7 }
  0x84   : > { %346 = vmatmul.mubr.f32.gmra.mxu0 %v1843_v33  ;;  %447 = vmatmul.mubr.f32.gmra.mxu1 %v1843_v33 }
  0x85   : > { %500 = vmatpush1.msra.mxu0 %v1703_v9  ;;  %601 = vmatpush1.msra.mxu1 %v1685_v4 }
  0x86   : > { %501 = vmatprep.subr.mxu0 %v1697_v8  ;;  %602 = vmatprep.subr.mxu1 %v1675_v0 }
  0x87   : > { %502 = vmatpush1.msra.mxu0 %v1709_v10  ;;  %603 = vmatpush1.msra.mxu1 %v1679_v2 }
  0x88   : > { %1303 = vmatprep.mubr.msk.f32.mxu0 %vm256_vm0, %v1855_v34  ;;  %1309 = vmatprep.mubr.msk.f32.mxu1 %vm256_vm0, %v1855_v34 }
  0x89   : > { %503 = vmatprep.subr.mxu0 %v1703_v9  ;;  %604 = vmatprep.subr.mxu1 %v1685_v4 }
  0x8a   : > { %352 = vmatmul.mubr.f32.gmra.mxu0 %v1861_v35  ;;  %453 = vmatmul.mubr.f32.gmra.mxu1 %v1861_v35 }
  0x8b   : > { %504 = vmatpush1.msra.mxu0 %v1715_v11  ;;  %605 = vmatpush1.msra.mxu1 %v1691_v6 }
  0x8c   : > { %505 = vmatprep.subr.mxu0 %v1709_v10  ;;  %606 = vmatprep.subr.mxu1 %v1679_v2 }
  0x8d   : > { %506 = vmatpush1.msra.mxu0 %v1721_v12  ;;  %607 = vmatpush1.msra.mxu1 %v1697_v8 }
  0x8e   : > { %1304 = vmatprep.mubr.msk.f32.mxu0 %vm256_vm0, %v1873_v36  ;;  %1310 = vmatprep.mubr.msk.f32.mxu1 %vm256_vm0, %v1873_v36 }
  0x8f   : > { %507 = vmatprep.subr.mxu0 %v1715_v11  ;;  %608 = vmatprep.subr.mxu1 %v1691_v6 }
  0x90   : > { %358 = vmatmul.mubr.f32.gmra.mxu0 %v1879_v37  ;;  %459 = vmatmul.mubr.f32.gmra.mxu1 %v1879_v37 }
  0x91   : > { %508 = vmatpush1.msra.mxu0 %v1727_v13  ;;  %609 = vmatpush1.msra.mxu1 %v1703_v9 }
  0x92   : > { %529 = vmatprep.subr.mxu0 %v1887_v38  ;;  %630 = vmatprep.subr.mxu1 %v1889_v39 }
  0x93   : > { %530 = vmatpush2.msra.mxu0 %v1788_v30  ;;  %631 = vmatpush2.msra.mxu1 %v1893_v40 }
  0x94   : > { %1305 = vmatprep.mubr.msk.f32.mxu0 %vm256_vm0, %v1897_v41  ;;  %1311 = vmatprep.mubr.msk.f32.mxu1 %vm256_vm0, %v1897_v41 }
  0x95   : > { %531 = vmatprep.subr.mxu0 %v1901_v42  ;;  %632 = vmatprep.subr.mxu1 %v1903_v43 }
  0x96   : > { %364 = vmatmul.mubr.f32.gmra.mxu0 %v1907_v44  ;;  %465 = vmatmul.mubr.f32.gmra.mxu1 %v1907_v44 }
  0x97   : > { %532 = vmatpush2.msra.mxu0 %v1795_v31  ;;  %633 = vmatpush2.msra.mxu1 %v1913_v45 }
  0x98   : > { %533 = vmatprep.subr.mxu0 %v1788_v30  ;;  %634 = vmatprep.subr.mxu1 %v1893_v40 }
  0x99   : > { %534 = vmatpush2.msra.mxu0 %v1749_v23  ;;  %635 = vmatpush2.msra.mxu1 %v1887_v38 }
  0x9a   : > { %1306 = vmatprep.mubr.msk.f32.mxu0 %vm256_vm0, %v1921_v46  ;;  %1312 = vmatprep.mubr.msk.f32.mxu1 %vm256_vm0, %v1921_v46 }
  0x9b   : > { %535 = vmatprep.subr.mxu0 %v1795_v31  ;;  %636 = vmatprep.subr.mxu1 %v1913_v45 }
  0x9c   : > { %370 = vmatmul.mubr.f32.gmra.mxu0 %v1927_v47  ;;  %471 = vmatmul.mubr.f32.gmra.mxu1 %v1927_v47 }
  0x9d   : > { %536 = vmatpush2.msra.mxu0 %v1755_v26  ;;  %637 = vmatpush2.msra.mxu1 %v1901_v42 }
  0x9e   : > { %537 = vmatprep.subr.mxu0 %v1749_v23  ;;  %638 = vmatprep.subr.mxu1 %v1887_v38 }
  0x9f   : > { %538 = vmatpush2.msra.mxu0 %v1751_v24  ;;  %639 = vmatpush2.msra.mxu1 %v1788_v30 }
  0xa0   : > { %539 = vmatprep.subr.mxu0 %v1755_v26  ;;  %640 = vmatprep.subr.mxu1 %v1901_v42 }
  0xa1   : > { %540 = vmatpush2.msra.mxu0 %v1759_v27  ;;  %1313 = vmatprep.mubr.msk.f32.mxu0 %vm256_vm0, %v1777_v28 }
  0xa2   : > { %641 = vmatpush2.msra.mxu1 %v1795_v31  ;;  %1319 = vmatprep.mubr.msk.f32.mxu1 %vm256_vm0, %v1777_v28 }
  0xa3   : > { %542 = vmatmul.mubr.f32.vlgmr.msra.gmra.mxu0 %v1783_v29  ;;  %643 = vmatmul.mubr.f32.vlgmr.msra.gmra.mxu1 %v1783_v29 }
  0xa4   : > { %679 = vmatprep.subr.mxu0 %v1893_v40  ;;  %780 = vmatprep.subr.mxu1 %v1948_v48 }
  0xa5   : > { %680 = vmatpush1.msra.mxu0 %v1887_v38  ;;  %781 = vmatpush1.msra.mxu1 %v1889_v39 }
  0xa6   : > { %681 = vmatprep.subr.mxu0 %v1913_v45  ;;  %782 = vmatprep.subr.mxu1 %v1955_v49 }
  0xa7   : > { %682 = vmatpush1.msra.mxu0 %v1901_v42  ;;  %783 = vmatpush1.msra.mxu1 %v1903_v43 }
  0xa8   : > { %683 = vmatprep.subr.mxu0 %v1887_v38  ;;  %784 = vmatprep.subr.mxu1 %v1889_v39 }
  0xa9   : > { %684 = vmatpush1.msra.mxu0 %v1788_v30  ;;  %785 = vmatpush1.msra.mxu1 %v1893_v40 }
  0xaa   : > { %685 = vmatprep.subr.mxu0 %v1901_v42  ;;  %786 = vmatprep.subr.mxu1 %v1903_v43 }
  0xab   : > { %686 = vmatpush1.msra.mxu0 %v1795_v31  ;;  %787 = vmatpush1.msra.mxu1 %v1913_v45 }
  0xac   : > { %687 = vmatprep.subr.mxu0 %v1788_v30  ;;  %788 = vmatprep.subr.mxu1 %v1893_v40 }
  0xad   : > { %688 = vmatpush1.msra.mxu0 %v1749_v23  ;;  %789 = vmatpush1.msra.mxu1 %v1887_v38 }
  0xae   : > { %689 = vmatprep.subr.mxu0 %v1795_v31  ;;  %790 = vmatprep.subr.mxu1 %v1913_v45 }
  0xaf   : > { %690 = vmatpush1.msra.mxu0 %v1755_v26  ;;  %791 = vmatpush1.msra.mxu1 %v1901_v42 }
  0xb0   : > { %691 = vmatprep.subr.mxu0 %v1749_v23  ;;  %792 = vmatprep.subr.mxu1 %v1887_v38 }
  0xb1   : > { %692 = vmatpush1.msra.mxu0 %v1751_v24  ;;  %793 = vmatpush1.msra.mxu1 %v1788_v30 }
  0xb2   : > { %693 = vmatprep.subr.mxu0 %v1755_v26  ;;  %794 = vmatprep.subr.mxu1 %v1901_v42 }
  0xb3   : > { %694 = vmatpush1.msra.mxu0 %v1759_v27  ;;  %795 = vmatpush1.msra.mxu1 %v1795_v31 }
  0xb4   : > { %695 = vmatprep.subr.mxu0 %v1751_v24  ;;  %796 = vmatprep.subr.mxu1 %v1788_v30 }
  0xb5   : > { %696 = vmatpush1.msra.mxu0 %v1747_v22  ;;  %797 = vmatpush1.msra.mxu1 %v1749_v23 }
  0xb6   : > { %697 = vmatprep.subr.mxu0 %v1759_v27  ;;  %798 = vmatprep.subr.mxu1 %v1795_v31 }
  0xb7   : > { %698 = vmatpush1.msra.mxu0 %v1753_v25  ;;  %799 = vmatpush1.msra.mxu1 %v1755_v26 }
  0xb8   : > { %699 = vmatprep.subr.mxu0 %v1747_v22  ;;  %800 = vmatprep.subr.mxu1 %v1749_v23 }
  0xb9   : > { %700 = vmatpush1.msra.mxu0 %v1677_v1  ;;  %801 = vmatpush1.msra.mxu1 %v1751_v24 }
  0xba   : > { %1314 = vmatprep.mubr.msk.f32.mxu0 %vm256_vm0, %v1837_v32  ;;  %1320 = vmatprep.mubr.msk.f32.mxu1 %vm256_vm0, %v1837_v32 }
  0xbb   : > { %701 = vmatprep.subr.mxu0 %v1753_v25  ;;  %802 = vmatprep.subr.mxu1 %v1755_v26 }
  0xbc   : > { %548 = vmatmul.mubr.f32.gmra.mxu0 %v1843_v33  ;;  %649 = vmatmul.mubr.f32.gmra.mxu1 %v1843_v33 }
  0xbd   : > { %702 = vmatpush1.msra.mxu0 %v1687_v5  ;;  %803 = vmatpush1.msra.mxu1 %v1759_v27 }
  0xbe   : > { %703 = vmatprep.subr.mxu0 %v1677_v1  ;;  %804 = vmatprep.subr.mxu1 %v1751_v24 }
  0xbf   : > { %704 = vmatpush1.msra.mxu0 %v1683_v3  ;;  %805 = vmatpush1.msra.mxu1 %v1747_v22 }
  0xc0   : > { %1315 = vmatprep.mubr.msk.f32.mxu0 %vm256_vm0, %v1855_v34  ;;  %1321 = vmatprep.mubr.msk.f32.mxu1 %vm256_vm0, %v1855_v34 }
  0xc1   : > { %705 = vmatprep.subr.mxu0 %v1687_v5  ;;  %806 = vmatprep.subr.mxu1 %v1759_v27 }
  0xc2   : > { %554 = vmatmul.mubr.f32.gmra.mxu0 %v1861_v35  ;;  %655 = vmatmul.mubr.f32.gmra.mxu1 %v1861_v35 }
  0xc3   : > { %706 = vmatpush1.msra.mxu0 %v1693_v7  ;;  %807 = vmatpush1.msra.mxu1 %v1753_v25 }
  0xc4   : > { %707 = vmatprep.subr.mxu0 %v1683_v3  ;;  %808 = vmatprep.subr.mxu1 %v1747_v22 }
  0xc5   : > { %708 = vmatpush1.msra.mxu0 %v1675_v0  ;;  %809 = vmatpush1.msra.mxu1 %v1677_v1 }
  0xc6   : > { %1316 = vmatprep.mubr.msk.f32.mxu0 %vm256_vm0, %v1873_v36  ;;  %1322 = vmatprep.mubr.msk.f32.mxu1 %vm256_vm0, %v1873_v36 }
  0xc7   : > { %709 = vmatprep.subr.mxu0 %v1693_v7  ;;  %810 = vmatprep.subr.mxu1 %v1753_v25 }
  0xc8   : > { %560 = vmatmul.mubr.f32.gmra.mxu0 %v1879_v37  ;;  %661 = vmatmul.mubr.f32.gmra.mxu1 %v1879_v37 }
  0xc9   : > { %710 = vmatpush1.msra.mxu0 %v1685_v4  ;;  %811 = vmatpush1.msra.mxu1 %v1687_v5 }
  0xca   : > { %731 = vmatprep.subr.mxu0 %v2035_v50  ;;  %832 = vmatprep.subr.mxu1 %v2037_v51 }
  0xcb   : > { %732 = vmatpush2.msra.mxu0 %v1948_v48  ;;  %833 = vmatpush2.msra.mxu1 %v2041_v52 }
  0xcc   : > { %1317 = vmatprep.mubr.msk.f32.mxu0 %vm256_vm0, %v1897_v41  ;;  %1323 = vmatprep.mubr.msk.f32.mxu1 %vm256_vm0, %v1897_v41 }
  0xcd   : > { %733 = vmatprep.subr.mxu0 %v2047_v53  ;;  %834 = vmatprep.subr.mxu1 %v2049_v54 }
  0xce   : > { %566 = vmatmul.mubr.f32.gmra.mxu0 %v1907_v44  ;;  %667 = vmatmul.mubr.f32.gmra.mxu1 %v1907_v44 }
  0xcf   : > { %734 = vmatpush2.msra.mxu0 %v1955_v49  ;;  %835 = vmatpush2.msra.mxu1 %v2057_v55 }
  0xd0   : > { %735 = vmatprep.subr.mxu0 %v1948_v48  ;;  %836 = vmatprep.subr.mxu1 %v2041_v52 }
  0xd1   : > { %736 = vmatpush2.msra.mxu0 %v1889_v39  ;;  %837 = vmatpush2.msra.mxu1 %v2035_v50 }
  0xd2   : > { %1318 = vmatprep.mubr.msk.f32.mxu0 %vm256_vm0, %v1921_v46  ;;  %1324 = vmatprep.mubr.msk.f32.mxu1 %vm256_vm0, %v1921_v46 }
  0xd3   : > { %737 = vmatprep.subr.mxu0 %v1955_v49  ;;  %838 = vmatprep.subr.mxu1 %v2057_v55 }
  0xd4   : > { %572 = vmatmul.mubr.f32.gmra.mxu0 %v1927_v47  ;;  %673 = vmatmul.mubr.f32.gmra.mxu1 %v1927_v47 }
  0xd5   : > { %738 = vmatpush2.msra.mxu0 %v1903_v43  ;;  %839 = vmatpush2.msra.mxu1 %v2047_v53 }
  0xd6   : > { %739 = vmatprep.subr.mxu0 %v1889_v39  ;;  %840 = vmatprep.subr.mxu1 %v2035_v50 }
  0xd7   : > { %740 = vmatpush2.msra.mxu0 %v1893_v40  ;;  %841 = vmatpush2.msra.mxu1 %v1948_v48 }
  0xd8   : > { %741 = vmatprep.subr.mxu0 %v1903_v43  ;;  %842 = vmatprep.subr.mxu1 %v2047_v53 }
  0xd9   : > { %742 = vmatpush2.msra.mxu0 %v1913_v45  ;;  %1325 = vmatprep.mubr.msk.f32.mxu0 %vm256_vm0, %v1777_v28 }
  0xda   : > { %843 = vmatpush2.msra.mxu1 %v1955_v49  ;;  %1331 = vmatprep.mubr.msk.f32.mxu1 %vm256_vm0, %v1777_v28 }
  0xdb   : > { %744 = vmatmul.mubr.f32.vlgmr.msra.gmra.mxu0 %v1783_v29  ;;  %845 = vmatmul.mubr.f32.vlgmr.msra.gmra.mxu1 %v1783_v29 }
  0xdc   : > { %881 = vmatprep.subr.mxu0 %v2041_v52  ;;  %982 = vmatprep.subr.mxu1 %v2088_v56 }
  0xdd   : > { %882 = vmatpush1.msra.mxu0 %v2035_v50  ;;  %983 = vmatpush1.msra.mxu1 %v2037_v51 }
  0xde   : > { %883 = vmatprep.subr.mxu0 %v2057_v55  ;;  %984 = vmatprep.subr.mxu1 %v2095_v57 }
  0xdf   : > { %884 = vmatpush1.msra.mxu0 %v2047_v53  ;;  %985 = vmatpush1.msra.mxu1 %v2049_v54 }
  0xe0   : > { %885 = vmatprep.subr.mxu0 %v2035_v50  ;;  %986 = vmatprep.subr.mxu1 %v2037_v51 }
  0xe1   : > { %886 = vmatpush1.msra.mxu0 %v1948_v48  ;;  %987 = vmatpush1.msra.mxu1 %v2041_v52 }
  0xe2   : > { %887 = vmatprep.subr.mxu0 %v2047_v53  ;;  %988 = vmatprep.subr.mxu1 %v2049_v54 }
  0xe3   : > { %888 = vmatpush1.msra.mxu0 %v1955_v49  ;;  %989 = vmatpush1.msra.mxu1 %v2057_v55 }
  0xe4   : > { %889 = vmatprep.subr.mxu0 %v1948_v48  ;;  %990 = vmatprep.subr.mxu1 %v2041_v52 }
  0xe5   : > { %890 = vmatpush1.msra.mxu0 %v1889_v39  ;;  %991 = vmatpush1.msra.mxu1 %v2035_v50 }
  0xe6   : > { %891 = vmatprep.subr.mxu0 %v1955_v49  ;;  %992 = vmatprep.subr.mxu1 %v2057_v55 }
  0xe7   : > { %892 = vmatpush1.msra.mxu0 %v1903_v43  ;;  %993 = vmatpush1.msra.mxu1 %v2047_v53 }
  0xe8   : > { %893 = vmatprep.subr.mxu0 %v1889_v39  ;;  %994 = vmatprep.subr.mxu1 %v2035_v50 }
  0xe9   : > { %894 = vmatpush1.msra.mxu0 %v1893_v40  ;;  %995 = vmatpush1.msra.mxu1 %v1948_v48 }
  0xea   : > { %895 = vmatprep.subr.mxu0 %v1903_v43  ;;  %996 = vmatprep.subr.mxu1 %v2047_v53 }
  0xeb   : > { %896 = vmatpush1.msra.mxu0 %v1913_v45  ;;  %997 = vmatpush1.msra.mxu1 %v1955_v49 }
  0xec   : > { %897 = vmatprep.subr.mxu0 %v1893_v40  ;;  %998 = vmatprep.subr.mxu1 %v1948_v48 }
  0xed   : > { %898 = vmatpush1.msra.mxu0 %v1887_v38  ;;  %999 = vmatpush1.msra.mxu1 %v1889_v39 }
  0xee   : > { %899 = vmatprep.subr.mxu0 %v1913_v45  ;;  %1000 = vmatprep.subr.mxu1 %v1955_v49 }
  0xef   : > { %900 = vmatpush1.msra.mxu0 %v1901_v42  ;;  %1001 = vmatpush1.msra.mxu1 %v1903_v43 }
  0xf0   : > { %901 = vmatprep.subr.mxu0 %v1887_v38  ;;  %1002 = vmatprep.subr.mxu1 %v1889_v39 }
  0xf1   : > { %1326 = vmatprep.mubr.msk.f32.mxu0 %vm256_vm0, %v1837_v32  ;;  %1332 = vmatprep.mubr.msk.f32.mxu1 %vm256_vm0, %v1837_v32 }
  0xf2   : > { %902 = vmatpush1.msra.mxu0 %v1788_v30  ;;  %1003 = vmatpush1.msra.mxu1 %v1893_v40 }
  0xf3   : > { %750 = vmatmul.mubr.f32.gmra.mxu0 %v1843_v33  ;;  %851 = vmatmul.mubr.f32.gmra.mxu1 %v1843_v33 }
  0xf4   : > { %903 = vmatprep.subr.mxu0 %v1901_v42  ;;  %1004 = vmatprep.subr.mxu1 %v1903_v43 }
  0xf5   : > { %904 = vmatpush1.msra.mxu0 %v1795_v31  ;;  %1005 = vmatpush1.msra.mxu1 %v1913_v45 }
  0xf6   : > { %905 = vmatprep.subr.mxu0 %v1788_v30  ;;  %1006 = vmatprep.subr.mxu1 %v1893_v40 }
  0xf7   : > { %1327 = vmatprep.mubr.msk.f32.mxu0 %vm256_vm0, %v1855_v34  ;;  %1333 = vmatprep.mubr.msk.f32.mxu1 %vm256_vm0, %v1855_v34 }
  0xf8   : > { %906 = vmatpush1.msra.mxu0 %v1749_v23  ;;  %1007 = vmatpush1.msra.mxu1 %v1887_v38 }
  0xf9   : > { %756 = vmatmul.mubr.f32.gmra.mxu0 %v1861_v35  ;;  %857 = vmatmul.mubr.f32.gmra.mxu1 %v1861_v35 }
  0xfa   : > { %907 = vmatprep.subr.mxu0 %v1795_v31  ;;  %1008 = vmatprep.subr.mxu1 %v1913_v45 }
  0xfb   : > { %908 = vmatpush1.msra.mxu0 %v1755_v26  ;;  %1009 = vmatpush1.msra.mxu1 %v1901_v42 }
  0xfc   : > { %909 = vmatprep.subr.mxu0 %v1749_v23  ;;  %1010 = vmatprep.subr.mxu1 %v1887_v38 }
  0xfd   : > { %1328 = vmatprep.mubr.msk.f32.mxu0 %vm256_vm0, %v1873_v36  ;;  %1334 = vmatprep.mubr.msk.f32.mxu1 %vm256_vm0, %v1873_v36 }
  0xfe   : > { %910 = vmatpush1.msra.mxu0 %v1751_v24  ;;  %1011 = vmatpush1.msra.mxu1 %v1788_v30 }
  0xff   : > { %762 = vmatmul.mubr.f32.gmra.mxu0 %v1879_v37  ;;  %863 = vmatmul.mubr.f32.gmra.mxu1 %v1879_v37 }
 0x100   : > { %911 = vmatprep.subr.mxu0 %v1755_v26  ;;  %1012 = vmatprep.subr.mxu1 %v1901_v42 }
 0x101   : > { %912 = vmatpush1.msra.mxu0 %v1759_v27  ;;  %1013 = vmatpush1.msra.mxu1 %v1795_v31 }
 0x102   : > { %933 = vmatprep.subr.mxu0 %v241_v58  ;;  %1034 = vmatprep.subr.mxu1 %v243_v59 }
 0x103   : > { %1329 = vmatprep.mubr.msk.f32.mxu0 %vm256_vm0, %v1897_v41  ;;  %1335 = vmatprep.mubr.msk.f32.mxu1 %vm256_vm0, %v1897_v41 }
 0x104   : > { %934 = vmatpush2.msra.mxu0 %v2088_v56  ;;  %1035 = vmatpush2.msra.mxu1 %v242_v60 }
 0x105   : > { %768 = vmatmul.mubr.f32.gmra.mxu0 %v1907_v44  ;;  %869 = vmatmul.mubr.f32.gmra.mxu1 %v1907_v44 }
 0x106   : > { %935 = vmatprep.subr.mxu0 %v215_v61  ;;  %1036 = vmatprep.subr.mxu1 %v217_v62 }
 0x107   : > { %936 = vmatpush2.msra.mxu0 %v2095_v57  ;;  %1037 = vmatpush2.msra.mxu1 %v216_v63 }
 0x108   : > { %937 = vmatprep.subr.mxu0 %v2088_v56  ;;  %1038 = vmatprep.subr.mxu1 %v242_v60 }
 0x109   : > { %1330 = vmatprep.mubr.msk.f32.mxu0 %vm256_vm0, %v1921_v46  ;;  %1336 = vmatprep.mubr.msk.f32.mxu1 %vm256_vm0, %v1921_v46 }
 0x10a   : > { %938 = vmatpush2.msra.mxu0 %v2037_v51  ;;  %1039 = vmatpush2.msra.mxu1 %v241_v58 }
 0x10b   : > { %774 = vmatmul.mubr.f32.gmra.mxu0 %v1927_v47  ;;  %875 = vmatmul.mubr.f32.gmra.mxu1 %v1927_v47 }
 0x10c   : > { %939 = vmatprep.subr.mxu0 %v2095_v57  ;;  %1040 = vmatprep.subr.mxu1 %v216_v63 }
 0x10d   : > { %940 = vmatpush2.msra.mxu0 %v2049_v54  ;;  %1041 = vmatpush2.msra.mxu1 %v215_v61 }
 0x10e   : > { %941 = vmatprep.subr.mxu0 %v2037_v51  ;;  %1042 = vmatprep.subr.mxu1 %v241_v58 }
 0x10f   : > { %942 = vmatpush2.msra.mxu0 %v2041_v52  ;;  %1043 = vmatpush2.msra.mxu1 %v2088_v56 }
 0x110   : > { %943 = vmatprep.subr.mxu0 %v2049_v54  ;;  %1044 = vmatprep.subr.mxu1 %v215_v61 }
 0x111   : > { %944 = vmatpush2.msra.mxu0 %v2057_v55  ;;  %1337 = vmatprep.mubr.msk.f32.mxu0 %vm256_vm0, %v1777_v28 }
 0x112   : > { %1045 = vmatpush2.msra.mxu1 %v2095_v57  ;;  %1343 = vmatprep.mubr.msk.f32.mxu1 %vm256_vm0, %v1777_v28 }
 0x113   : > { %946 = vmatmul.mubr.f32.vlgmr.msra.gmra.mxu0 %v1783_v29  ;;  %1047 = vmatmul.mubr.f32.vlgmr.msra.gmra.mxu1 %v1783_v29 }
 0x114   : > { %1338 = vmatprep.mubr.msk.f32.mxu0 %vm256_vm0, %v1837_v32  ;;  %1344 = vmatprep.mubr.msk.f32.mxu1 %vm256_vm0, %v1837_v32 }
 0x117   : > { %952 = vmatmul.mubr.f32.gmra.mxu0 %v1843_v33  ;;  %1053 = vmatmul.mubr.f32.gmra.mxu1 %v1843_v33 }
 0x118   : > { %1339 = vmatprep.mubr.msk.f32.mxu0 %vm256_vm0, %v1855_v34  ;;  %1345 = vmatprep.mubr.msk.f32.mxu1 %vm256_vm0, %v1855_v34 }
 0x11b   : > { %958 = vmatmul.mubr.f32.gmra.mxu0 %v1861_v35  ;;  %1059 = vmatmul.mubr.f32.gmra.mxu1 %v1861_v35 }
 0x11c   : > { %1340 = vmatprep.mubr.msk.f32.mxu0 %vm256_vm0, %v1873_v36  ;;  %1346 = vmatprep.mubr.msk.f32.mxu1 %vm256_vm0, %v1873_v36 }
 0x11f   : > { %964 = vmatmul.mubr.f32.gmra.mxu0 %v1879_v37  ;;  %1065 = vmatmul.mubr.f32.gmra.mxu1 %v1879_v37 }
 0x120   : > { %1341 = vmatprep.mubr.msk.f32.mxu0 %vm256_vm0, %v1897_v41  ;;  %1347 = vmatprep.mubr.msk.f32.mxu1 %vm256_vm0, %v1897_v41 }
 0x123   : > { %970 = vmatmul.mubr.f32.gmra.mxu0 %v1907_v44  ;;  %1071 = vmatmul.mubr.f32.gmra.mxu1 %v1907_v44 }
 0x124   : > { %1342 = vmatprep.mubr.msk.f32.mxu0 %vm256_vm0, %v1921_v46  ;;  %1348 = vmatprep.mubr.msk.f32.mxu1 %vm256_vm0, %v1921_v46 }
 0x127   : > { %976 = vmatmul.mubr.f32.gmra.mxu0 %v1927_v47  ;;  %1077 = vmatmul.mubr.f32.gmra.mxu1 %v1927_v47 }
 0x12b   : > { %v341_v0 = vpop.f32.mrf.mxu0  ;;  %v442_v1 = vpop.f32.mrf.mxu1 }
 0x12c   : > { %1083 = vst [vmem:[%s1673_s30] sm:$0xff] %v341_v0  ;;  %1085 = vst [vmem:[%s1673_s30 + $0x10] sm:$0xff] %v442_v1 }
 0x12d   : > { %v343_v2 = vpop.f32.mrf.mxu0  ;;  %v444_v3 = vpop.f32.mrf.mxu1 }
 0x12e   : > { %1084 = vst [vmem:[%s1673_s30 + $0x8] sm:$0xff] %v343_v2  ;;  %1086 = vst [vmem:[%s1673_s30 + $0x18] sm:$0xff] %v444_v3 }
 0x144   : > { %v347_v4 = vpop.f32.mrf.mxu0  ;;  %v448_v5 = vpop.f32.mrf.mxu1 }
 0x145   : > { %1099 = vst [vmem:[%s1673_s30 + $0x80] sm:$0xff] %v347_v4  ;;  %1101 = vst [vmem:[%s1673_s30 + $0x90] sm:$0xff] %v448_v5 }
 0x146   : > { %v349_v6 = vpop.f32.mrf.mxu0  ;;  %v450_v7 = vpop.f32.mrf.mxu1 }
 0x147   : > { %1100 = vst [vmem:[%s1673_s30 + $0x88] sm:$0xff] %v349_v6  ;;  %1102 = vst [vmem:[%s1673_s30 + $0x98] sm:$0xff] %v450_v7 }
 0x14a   : > { %v353_v8 = vpop.f32.mrf.mxu0  ;;  %v454_v9 = vpop.f32.mrf.mxu1 }
 0x14b   : > { %1115 = vst [vmem:[%s1673_s30 + $0x100] sm:$0xff] %v353_v8  ;;  %1117 = vst [vmem:[%s1673_s30 + $0x110] sm:$0xff] %v454_v9 }
 0x14c   : > { %v355_v10 = vpop.f32.mrf.mxu0  ;;  %v456_v11 = vpop.f32.mrf.mxu1 }
 0x14d   : > { %1116 = vst [vmem:[%s1673_s30 + $0x108] sm:$0xff] %v355_v10  ;;  %1118 = vst [vmem:[%s1673_s30 + $0x118] sm:$0xff] %v456_v11 }
 0x150   : > { %v359_v12 = vpop.f32.mrf.mxu0  ;;  %v460_v13 = vpop.f32.mrf.mxu1 }
 0x151   : > { %1131 = vst [vmem:[%s1673_s30 + $0x180] sm:$0xff] %v359_v12  ;;  %1133 = vst [vmem:[%s1673_s30 + $0x190] sm:$0xff] %v460_v13 }
 0x152   : > { %v361_v14 = vpop.f32.mrf.mxu0  ;;  %v462_v15 = vpop.f32.mrf.mxu1 }
 0x153   : > { %1132 = vst [vmem:[%s1673_s30 + $0x188] sm:$0xff] %v361_v14  ;;  %1134 = vst [vmem:[%s1673_s30 + $0x198] sm:$0xff] %v462_v15 }
 0x156   : > { %v365_v16 = vpop.f32.mrf.mxu0  ;;  %v466_v17 = vpop.f32.mrf.mxu1 }
 0x157   : > { %1147 = vst [vmem:[%s1673_s30 + $0x200] sm:$0xff] %v365_v16  ;;  %1149 = vst [vmem:[%s1673_s30 + $0x210] sm:$0xff] %v466_v17 }
 0x158   : > { %v367_v18 = vpop.f32.mrf.mxu0  ;;  %v468_v19 = vpop.f32.mrf.mxu1 }
 0x159   : > { %1148 = vst [vmem:[%s1673_s30 + $0x208] sm:$0xff] %v367_v18  ;;  %1150 = vst [vmem:[%s1673_s30 + $0x218] sm:$0xff] %v468_v19 }
 0x15c   : > { %v371_v20 = vpop.f32.mrf.mxu0  ;;  %v472_v21 = vpop.f32.mrf.mxu1 }
 0x15d   : > { %1163 = vst [vmem:[%s1673_s30 + $0x280] sm:$0xff] %v371_v20  ;;  %1165 = vst [vmem:[%s1673_s30 + $0x290] sm:$0xff] %v472_v21 }
 0x15e   : > { %v373_v22 = vpop.f32.mrf.mxu0  ;;  %v474_v23 = vpop.f32.mrf.mxu1 }
 0x15f   : > { %1164 = vst [vmem:[%s1673_s30 + $0x288] sm:$0xff] %v373_v22  ;;  %1166 = vst [vmem:[%s1673_s30 + $0x298] sm:$0xff] %v474_v23 }
 0x163   : > { %v543_v24 = vpop.f32.mrf.mxu0  ;;  %v644_v25 = vpop.f32.mrf.mxu1 }
 0x164   : > { %1087 = vst [vmem:[%s1673_s30 + $0x20] sm:$0xff] %v543_v24  ;;  %1089 = vst [vmem:[%s1673_s30 + $0x30] sm:$0xff] %v644_v25 }
 0x165   : > { %v545_v26 = vpop.f32.mrf.mxu0  ;;  %v646_v27 = vpop.f32.mrf.mxu1 }
 0x166   : > { %1088 = vst [vmem:[%s1673_s30 + $0x28] sm:$0xff] %v545_v26  ;;  %1090 = vst [vmem:[%s1673_s30 + $0x38] sm:$0xff] %v646_v27 }
 0x17c   : > { %v549_v28 = vpop.f32.mrf.mxu0  ;;  %v650_v29 = vpop.f32.mrf.mxu1 }
 0x17d   : > { %1103 = vst [vmem:[%s1673_s30 + $0xa0] sm:$0xff] %v549_v28  ;;  %1105 = vst [vmem:[%s1673_s30 + $0xb0] sm:$0xff] %v650_v29 }
 0x17e   : > { %v551_v30 = vpop.f32.mrf.mxu0  ;;  %v652_v31 = vpop.f32.mrf.mxu1 }
 0x17f   : > { %1104 = vst [vmem:[%s1673_s30 + $0xa8] sm:$0xff] %v551_v30  ;;  %1106 = vst [vmem:[%s1673_s30 + $0xb8] sm:$0xff] %v652_v31 }
 0x182   : > { %v555_v32 = vpop.f32.mrf.mxu0  ;;  %v656_v33 = vpop.f32.mrf.mxu1 }
 0x183   : > { %1119 = vst [vmem:[%s1673_s30 + $0x120] sm:$0xff] %v555_v32  ;;  %1121 = vst [vmem:[%s1673_s30 + $0x130] sm:$0xff] %v656_v33 }
 0x184   : > { %v557_v34 = vpop.f32.mrf.mxu0  ;;  %v658_v35 = vpop.f32.mrf.mxu1 }
 0x185   : > { %1120 = vst [vmem:[%s1673_s30 + $0x128] sm:$0xff] %v557_v34  ;;  %1122 = vst [vmem:[%s1673_s30 + $0x138] sm:$0xff] %v658_v35 }
 0x188   : > { %v561_v36 = vpop.f32.mrf.mxu0  ;;  %v662_v37 = vpop.f32.mrf.mxu1 }
 0x189   : > { %1135 = vst [vmem:[%s1673_s30 + $0x1a0] sm:$0xff] %v561_v36  ;;  %1137 = vst [vmem:[%s1673_s30 + $0x1b0] sm:$0xff] %v662_v37 }
 0x18a   : > { %v563_v38 = vpop.f32.mrf.mxu0  ;;  %v664_v39 = vpop.f32.mrf.mxu1 }
 0x18b   : > { %1136 = vst [vmem:[%s1673_s30 + $0x1a8] sm:$0xff] %v563_v38  ;;  %1138 = vst [vmem:[%s1673_s30 + $0x1b8] sm:$0xff] %v664_v39 }
 0x18e   : > { %v567_v40 = vpop.f32.mrf.mxu0  ;;  %v668_v41 = vpop.f32.mrf.mxu1 }
 0x18f   : > { %1151 = vst [vmem:[%s1673_s30 + $0x220] sm:$0xff] %v567_v40  ;;  %1153 = vst [vmem:[%s1673_s30 + $0x230] sm:$0xff] %v668_v41 }
 0x190   : > { %v569_v42 = vpop.f32.mrf.mxu0  ;;  %v670_v43 = vpop.f32.mrf.mxu1 }
 0x191   : > { %1152 = vst [vmem:[%s1673_s30 + $0x228] sm:$0xff] %v569_v42  ;;  %1154 = vst [vmem:[%s1673_s30 + $0x238] sm:$0xff] %v670_v43 }
 0x194   : > { %v573_v44 = vpop.f32.mrf.mxu0  ;;  %v674_v45 = vpop.f32.mrf.mxu1 }
 0x195   : > { %1167 = vst [vmem:[%s1673_s30 + $0x2a0] sm:$0xff] %v573_v44  ;;  %1169 = vst [vmem:[%s1673_s30 + $0x2b0] sm:$0xff] %v674_v45 }
 0x196   : > { %v575_v46 = vpop.f32.mrf.mxu0  ;;  %v676_v47 = vpop.f32.mrf.mxu1 }
 0x197   : > { %1168 = vst [vmem:[%s1673_s30 + $0x2a8] sm:$0xff] %v575_v46  ;;  %1170 = vst [vmem:[%s1673_s30 + $0x2b8] sm:$0xff] %v676_v47 }
 0x19b   : > { %v745_v48 = vpop.f32.mrf.mxu0  ;;  %v846_v49 = vpop.f32.mrf.mxu1 }
 0x19c   : > { %1091 = vst [vmem:[%s1673_s30 + $0x40] sm:$0xff] %v745_v48  ;;  %1093 = vst [vmem:[%s1673_s30 + $0x50] sm:$0xff] %v846_v49 }
 0x19d   : > { %v747_v50 = vpop.f32.mrf.mxu0  ;;  %v848_v51 = vpop.f32.mrf.mxu1 }
 0x19e   : > { %1092 = vst [vmem:[%s1673_s30 + $0x48] sm:$0xff] %v747_v50  ;;  %1094 = vst [vmem:[%s1673_s30 + $0x58] sm:$0xff] %v848_v51 }
 0x1b3   : > { %v751_v52 = vpop.f32.mrf.mxu0  ;;  %v852_v53 = vpop.f32.mrf.mxu1 }
 0x1b4   : > { %1107 = vst [vmem:[%s1673_s30 + $0xc0] sm:$0xff] %v751_v52  ;;  %1109 = vst [vmem:[%s1673_s30 + $0xd0] sm:$0xff] %v852_v53 }
 0x1b5   : > { %v753_v54 = vpop.f32.mrf.mxu0  ;;  %v854_v55 = vpop.f32.mrf.mxu1 }
 0x1b6   : > { %1108 = vst [vmem:[%s1673_s30 + $0xc8] sm:$0xff] %v753_v54  ;;  %1110 = vst [vmem:[%s1673_s30 + $0xd8] sm:$0xff] %v854_v55 }
 0x1b9   : > { %v757_v56 = vpop.f32.mrf.mxu0  ;;  %v858_v57 = vpop.f32.mrf.mxu1 }
 0x1ba   : > { %1123 = vst [vmem:[%s1673_s30 + $0x140] sm:$0xff] %v757_v56  ;;  %1125 = vst [vmem:[%s1673_s30 + $0x150] sm:$0xff] %v858_v57 }
 0x1bb   : > { %v759_v58 = vpop.f32.mrf.mxu0  ;;  %v860_v59 = vpop.f32.mrf.mxu1 }
 0x1bc   : > { %1124 = vst [vmem:[%s1673_s30 + $0x148] sm:$0xff] %v759_v58  ;;  %1126 = vst [vmem:[%s1673_s30 + $0x158] sm:$0xff] %v860_v59 }
 0x1bf   : > { %v763_v60 = vpop.f32.mrf.mxu0  ;;  %v864_v61 = vpop.f32.mrf.mxu1 }
 0x1c0   : > { %1139 = vst [vmem:[%s1673_s30 + $0x1c0] sm:$0xff] %v763_v60  ;;  %1141 = vst [vmem:[%s1673_s30 + $0x1d0] sm:$0xff] %v864_v61 }
 0x1c1   : > { %v765_v62 = vpop.f32.mrf.mxu0  ;;  %v866_v63 = vpop.f32.mrf.mxu1 }
 0x1c2   : > { %1140 = vst [vmem:[%s1673_s30 + $0x1c8] sm:$0xff] %v765_v62  ;;  %1142 = vst [vmem:[%s1673_s30 + $0x1d8] sm:$0xff] %v866_v63 }
 0x1c5   : > { %v769_v0 = vpop.f32.mrf.mxu0  ;;  %v870_v1 = vpop.f32.mrf.mxu1 }
 0x1c6   : > { %1155 = vst [vmem:[%s1673_s30 + $0x240] sm:$0xff] %v769_v0  ;;  %1157 = vst [vmem:[%s1673_s30 + $0x250] sm:$0xff] %v870_v1 }
 0x1c7   : > { %v771_v2 = vpop.f32.mrf.mxu0  ;;  %v872_v3 = vpop.f32.mrf.mxu1 }
 0x1c8   : > { %1156 = vst [vmem:[%s1673_s30 + $0x248] sm:$0xff] %v771_v2  ;;  %1158 = vst [vmem:[%s1673_s30 + $0x258] sm:$0xff] %v872_v3 }
 0x1cb   : > { %v775_v4 = vpop.f32.mrf.mxu0  ;;  %v876_v5 = vpop.f32.mrf.mxu1 }
 0x1cc   : > { %1171 = vst [vmem:[%s1673_s30 + $0x2c0] sm:$0xff] %v775_v4  ;;  %1173 = vst [vmem:[%s1673_s30 + $0x2d0] sm:$0xff] %v876_v5 }
 0x1cd   : > { %v777_v6 = vpop.f32.mrf.mxu0  ;;  %v878_v7 = vpop.f32.mrf.mxu1 }
 0x1ce   : > { %1172 = vst [vmem:[%s1673_s30 + $0x2c8] sm:$0xff] %v777_v6  ;;  %1174 = vst [vmem:[%s1673_s30 + $0x2d8] sm:$0xff] %v878_v7 }
 0x1d3   : > { %v947_v8 = vpop.f32.mrf.mxu0  ;;  %v1048_v9 = vpop.f32.mrf.mxu1 }
 0x1d4   : > { %1095 = vst [vmem:[%s1673_s30 + $0x60] sm:$0xff] %v947_v8  ;;  %1097 = vst [vmem:[%s1673_s30 + $0x70] sm:$0xff] %v1048_v9 }
 0x1d5   : > { %v949_v10 = vpop.f32.mrf.mxu0  ;;  %v1050_v11 = vpop.f32.mrf.mxu1 }
 0x1d6   : > { %1096 = vst [vmem:[%s1673_s30 + $0x68] sm:$0xff] %v949_v10  ;;  %1098 = vst [vmem:[%s1673_s30 + $0x78] sm:$0xff] %v1050_v11 }
 0x1d7   : > { %v953_v12 = vpop.f32.mrf.mxu0  ;;  %v1054_v13 = vpop.f32.mrf.mxu1 }
 0x1d8   : > { %1111 = vst [vmem:[%s1673_s30 + $0xe0] sm:$0xff] %v953_v12  ;;  %1113 = vst [vmem:[%s1673_s30 + $0xf0] sm:$0xff] %v1054_v13 }
 0x1d9   : > { %v955_v14 = vpop.f32.mrf.mxu0  ;;  %v1056_v15 = vpop.f32.mrf.mxu1 }
 0x1da   : > { %1112 = vst [vmem:[%s1673_s30 + $0xe8] sm:$0xff] %v955_v14  ;;  %1114 = vst [vmem:[%s1673_s30 + $0xf8] sm:$0xff] %v1056_v15 }
 0x1db   : > { %v959_v16 = vpop.f32.mrf.mxu0  ;;  %v1060_v17 = vpop.f32.mrf.mxu1 }
 0x1dc   : > { %1127 = vst [vmem:[%s1673_s30 + $0x160] sm:$0xff] %v959_v16  ;;  %1129 = vst [vmem:[%s1673_s30 + $0x170] sm:$0xff] %v1060_v17 }
 0x1dd   : > { %v961_v18 = vpop.f32.mrf.mxu0  ;;  %v1062_v19 = vpop.f32.mrf.mxu1 }
 0x1de   : > { %1128 = vst [vmem:[%s1673_s30 + $0x168] sm:$0xff] %v961_v18  ;;  %1130 = vst [vmem:[%s1673_s30 + $0x178] sm:$0xff] %v1062_v19 }
 0x1df   : > { %v965_v20 = vpop.f32.mrf.mxu0  ;;  %v1066_v21 = vpop.f32.mrf.mxu1 }
 0x1e0   : > { %1143 = vst [vmem:[%s1673_s30 + $0x1e0] sm:$0xff] %v965_v20  ;;  %1145 = vst [vmem:[%s1673_s30 + $0x1f0] sm:$0xff] %v1066_v21 }
 0x1e1   : > { %v967_v22 = vpop.f32.mrf.mxu0  ;;  %v1068_v23 = vpop.f32.mrf.mxu1 }
 0x1e2   : > { %1144 = vst [vmem:[%s1673_s30 + $0x1e8] sm:$0xff] %v967_v22  ;;  %1146 = vst [vmem:[%s1673_s30 + $0x1f8] sm:$0xff] %v1068_v23 }
 0x1e3   : > { %v971_v24 = vpop.f32.mrf.mxu0  ;;  %v1072_v25 = vpop.f32.mrf.mxu1 }
 0x1e4   : > { %1159 = vst [vmem:[%s1673_s30 + $0x260] sm:$0xff] %v971_v24  ;;  %1161 = vst [vmem:[%s1673_s30 + $0x270] sm:$0xff] %v1072_v25 }
 0x1e5   : > { %v973_v26 = vpop.f32.mrf.mxu0  ;;  %v1074_v27 = vpop.f32.mrf.mxu1 }
 0x1e6   : > { %1160 = vst [vmem:[%s1673_s30 + $0x268] sm:$0xff] %v973_v26  ;;  %1162 = vst [vmem:[%s1673_s30 + $0x278] sm:$0xff] %v1074_v27 }
 0x1e7   : > { %v977_v28 = vpop.f32.mrf.mxu0  ;;  %v1078_v29 = vpop.f32.mrf.mxu1 }
 0x1e8   : > { %1175 = vst [vmem:[%s1673_s30 + $0x2e0] sm:$0xff] %v977_v28  ;;  %1177 = vst [vmem:[%s1673_s30 + $0x2f0] sm:$0xff] %v1078_v29 }
 0x1e9   : > { %v979_v30 = vpop.f32.mrf.mxu0  ;;  %v1080_v31 = vpop.f32.mrf.mxu1 }
 0x1ea   : > { %1176 = vst [vmem:[%s1673_s30 + $0x2e8] sm:$0xff] %v979_v30  ;;  %1178 = vst [vmem:[%s1673_s30 + $0x2f8] sm:$0xff] %v1080_v31 }
 0x1eb   : > { %1491 = shalt.err (!%p1488_p0)
}
 0x1ec   : > { %s1492_s4 = scalar_lea.hbm %s2336_s8, 12288  ;;  %s1496_s24 = scalar_lea.hbm %s2393_s2, 24576 }
 0x1ed   : > { %p1493_p1 = scmp.ne.s32.totalorder %s2336_s8, %s1492_s4  ;;  %p1497_p5 = scmp.lt.s32.totalorder %s2336_s8, %s2393_s2 }
 0x1ee   : > { %p1498_p6 = scmp.lt.s32.totalorder %s1496_s24, %s1492_s4 }
 0x1ef   : > { %p1494_p2 = pnand %p1493_p1, %p1624_p4 }
 0x1f0   : > { %p1499_p7 = por %p1498_p6, %p1497_p5 }
 0x1f1   : > { %p1495_p3 = pneg %p1494_p2 }
 0x1f3   : > { %p1500_p9 = pnand %p1499_p7, %p1495_p3 }
 0x1f5   : > { %1503 = shalt.err (!%p1500_p9)
}
 0x1f6   : > { %s1567_s28 = smov 2048   ;;  %s1568_s29 = smov 128  }
 0x1f7   : > { %1363 = dma.vmem_to_hbm [thread:$0]  (%p1624_p4), %s2338_s5, 12288, %s2336_s8, %s2346_s12, %s1567_s28, %s1567_s28, %s1568_s29  }
 0x1f8 PF: > { %p1375_p10 = scmp.ge.s32.totalorder %s1560_s14, 2  ;;  %s1210_s30 = sand.u32 1, %s1540_s9  }
 0x1f9   : > { %s1211_s3 = scalar_lea.sflag [#allocation6], %s1210_s30 }
 0x1fa   : > { %p1370_p11 = pnand %p1375_p10, %p1631_p8 }
 0x1fc   : > { %p1371_p12 = pneg %p1370_p11 }
 0x1fe   : > { %1535 = dma.done.wait (%p1371_p12), %s1211_s3, 12288  }
 0x1ff   : > { %1537 = vsyncadd (%p1371_p12), %s1211_s3, 4294955008  ;;  %s16_s14 = sadd.s32 1, %s1560_s14   ;;  %s2398_s9 = smov %s1544_s10 }
 0x200   : > { %p13_p13 = scmp.ge.s32.totalorder %s16_s14, 4   ;;  %s2399_s10 = smov %s1548_s11 }
 0x201   : > { %s2400_s11 = smov %s1637_s22  ;;  %s2401_s12 = smov %s1556_s13 }
 0x202   : > { %s2402_s13 = smov %s2404_s17  ;;  %15 = sbr.rel (!%p13_p13) target bundleno = 5 (0x5), region = 84 }
 0x207   :  { %1216 = vsyncpa [#allocation5], 1 }
 0x208   :  { %1218 = vsyncpa [#allocation5 + $0x1], 1 }
 0x209   :  { %1219 = vsyncpa [#allocation6], 1 }
 0x20a   :  { %1221 = vsyncpa [#allocation6 + $0x1], 1 }
 0x20b   :  { %1222 = vsyncmov [#allocation3] }
 0x20e   :  { %s1223_s19 = vpop.sfrf %1222 }
 0x20f   :  { %p1352_p4 = scmp.ne.s32.totalorder %s1223_s19, 0 }
 0x211   :  { %1227 = shalt.err (%p1352_p4)  }
 0x212   :  { %1229 = vsyncmov [#allocation3 + $0x1] }
 0x215   :  { %s1230_s21 = vpop.sfrf %1229 }
 0x216   :  { %p1353_p8 = scmp.ne.s32.totalorder %s1230_s21, 0 }
 0x218   :  { %1234 = shalt.err (%p1353_p8)  }

</bundles_post_ra>
